<compile_context>
chip_gen: v6e
topology: v6e:2x2x1
jax: 0.10.0
libtpu: 0.0.40
codegen_flags: <defaults>
</compile_context>

<pallas_src>
import math
import numpy as np
import jax
import jax.numpy as jnp
from jax import lax
from jax.experimental import pallas as pl
from jax.experimental.pallas import tpu as pltpu  # noqa: F401 (kept for compiler_params at real sizes)

# ---- small config consistent with Phi3DecoderLayer ----
B, S, H = 2, 8, 32          # batch, seq_len, hidden_size
BS = B * S                  # flattened token count
NH, NKV = 4, 2              # num_attention_heads, num_key_value_heads
HD = H // NH                # head_dim = 8
NREP = NH // NKV            # num_key_value_groups
I = 64                      # intermediate_size
OP = NH * HD + 2 * NKV * HD # qkv_proj output size
EPS = 1e-6                  # rms_norm_eps
ROPE_THETA = 10000.0
NEG = -1e30                 # causal-mask fill value (f32 scores)
INV_SQRT_HD = 1.0 / math.sqrt(HD)
LOG2_S = S.bit_length() - 1  # S is a power of two (used for the block-diag mask via shifts)
assert (S & (S - 1)) == 0


def _rms_norm(x, w):
    var = jnp.mean(x * x, axis=-1, keepdims=True)
    return w * (x * lax.rsqrt(var + EPS))


# -------- single fused decoder-layer kernel (whole batch in one invocation) --------
def phi3_layer_kernel(x_ref, ln_ref, wqkv_ref, wo_ref, wgup_ref, wdown_ref, cs_ref, out_ref):
    x = x_ref[...]                        # (BS, H) flattened tokens
    ln1 = ln_ref[0:1, :]                  # (1, H)
    ln2 = ln_ref[1:2, :]                  # (1, H)
    cos = cs_ref[:, :HD]                  # (BS, HD)  already tiled over batch
    sin = cs_ref[:, HD:]                  # (BS, HD)

    # ---- input RMSNorm + fused qkv projection (1/sqrt(HD) pre-folded into q columns) ----
    xn = _rms_norm(x, ln1)
    qkv = jnp.dot(xn, wqkv_ref[...], preferred_element_type=jnp.float32)   # (BS, OP)
    q_all = qkv[:, : NH * HD]
    k_all = qkv[:, NH * HD: NH * HD + NKV * HD]
    v_all = qkv[:, NH * HD + NKV * HD:]

    def rope(t):
        # rotate_half via slice+concat: HD=8 sits well inside one vreg's lanes; at real
        # HD (>=96) use pltpu.roll with a sign-folded sin table instead.
        t1 = t[:, : HD // 2]
        t2 = t[:, HD // 2:]
        rot = jnp.concatenate([-t2, t1], axis=-1)
        return t * cos + rot * sin

    # ---- block-diagonal causal mask over the flattened B*S token axis (no concats,
    #      shifts instead of vector // and %) ----
    ri = lax.broadcasted_iota(jnp.int32, (BS, BS), 0)
    ci = lax.broadcasted_iota(jnp.int32, (BS, BS), 1)
    same_batch = (ri >> LOG2_S) == (ci >> LOG2_S)
    keep = same_batch & (ri >= ci)        # within a batch block, flat order == seq order
    neg_mask = jnp.where(keep, 0.0, NEG).astype(jnp.float32)               # (BS, BS)

    # ---- GQA causal attention; each head accumulated straight into attn_out through its
    #      o_proj slice (no ctx lane-concat) ----
    attn_out = jnp.zeros((BS, H), jnp.float32)
    for g in range(NKV):
        k_g = rope(k_all[:, g * HD:(g + 1) * HD])                          # (BS, HD)
        v_g = v_all[:, g * HD:(g + 1) * HD]                                # (BS, HD)
        for r in range(NREP):
            hi = g * NREP + r
            q_h = rope(q_all[:, hi * HD:(hi + 1) * HD])                    # (BS, HD)
            sc = jnp.einsum('qd,kd->qk', q_h, k_g,
                            preferred_element_type=jnp.float32)            # (BS, BS)
            sc = sc + neg_mask
            sc = sc - jnp.max(sc, axis=-1, keepdims=True)                  # f32 softmax
            p = jnp.exp(sc)
            p = p * pl.reciprocal(jnp.sum(p, axis=-1, keepdims=True), approx=True)
            ctx_h = jnp.dot(p, v_g, preferred_element_type=jnp.float32)    # (BS, HD)
            attn_out = attn_out + jnp.dot(
                ctx_h, wo_ref[hi * HD:(hi + 1) * HD, :],
                preferred_element_type=jnp.float32)                        # (BS, H)

    # ---- residual + post-attn RMSNorm + gated MLP + residual (dropouts = identity, eval) ----
    h1 = x + attn_out
    hn2 = _rms_norm(h1, ln2)
    gu = jnp.dot(hn2, wgup_ref[...], preferred_element_type=jnp.float32)   # (BS, 2I)
    gate = gu[:, :I]
    up = gu[:, I:]
    act = up * (gate * jax.nn.sigmoid(gate))                               # SiLU gating
    y = h1 + jnp.dot(act, wdown_ref[...], preferred_element_type=jnp.float32)  # (BS, H)

    # ---- lane-dense store: pack into (B, S*H) = (2, 256) so the HBM write is an unmasked
    #      256-lane slab; lane-concat boundaries at >=128 lanes are kept tile-aligned ----
    toks_per_tile = max(1, 128 // H)      # 4 tokens of H=32 fill one 128-lane tile
    rows = []
    for bi in range(B):
        tiles = []
        for base in range(0, S, toks_per_tile):
            tiles.append(jnp.concatenate(
                [y[bi * S + base + t: bi * S + base + t + 1, :]
                 for t in range(toks_per_tile)], axis=1))                  # (1, 128)
        rows.append(jnp.concatenate(tiles, axis=1))                        # (1, S*H)
    out_ref[...] = jnp.concatenate(rows, axis=0)                           # (B, S*H)


def phi3_decoder_layer(x, ln1, ln2, wqkv_t, wo_t, wgup_t, wdown_t, cos, sin):
    """x: (B, S, H) f32; *_t weights are already transposed to (in, out)."""
    # Static parameter prep (tiny, one-off):
    #  * fold the attention scale into the q columns of the qkv weight,
    #  * pack ln1/ln2 and cos/sin each into a single block,
    #  * flatten tokens to (B*S, H) (contiguous, free reshape).
    wqkv_scaled = wqkv_t.at[:, : NH * HD].multiply(INV_SQRT_HD)
    ln = jnp.stack([ln1, ln2], axis=0)                                      # (2, H)
    cs = jnp.concatenate([jnp.tile(cos, (B, 1)), jnp.tile(sin, (B, 1))], axis=-1)  # (BS, 2*HD)
    x2d = x.reshape(BS, H)

    # Single grid step (grid=()): on 1-TC chips (v5e/v6e) a B-sized grid is a serial loop
    # paying ~0.35us/step of pure overhead at this size, so process the whole slab at once.
    # TODO(synk): at real Phi3 sizes (and to use v7x's 2 TensorCores) add a "parallel"
    # S-block grid axis, N-tile the qkv/gate_up/down weight matmuls (bf16, Buffered(2-3),
    # explicit vmem_limit_bytes), and flash-tile attention instead of (S,S) scores.
    out_flat = pl.pallas_call(
        phi3_layer_kernel,
        out_shape=jax.ShapeDtypeStruct((B, S * H), jnp.float32),
        in_specs=[
            pl.BlockSpec((BS, H), lambda: (0, 0)),          # hidden states (flattened tokens)
            pl.BlockSpec((2, H), lambda: (0, 0)),           # ln1/ln2 packed
            pl.BlockSpec((H, OP), lambda: (0, 0)),          # qkv_proj (q columns pre-scaled)
            pl.BlockSpec((NH * HD, H), lambda: (0, 0)),     # o_proj
            pl.BlockSpec((H, 2 * I), lambda: (0, 0)),       # gate_up_proj
            pl.BlockSpec((I, H), lambda: (0, 0)),           # down_proj
            pl.BlockSpec((BS, 2 * HD), lambda: (0, 0)),     # cos || sin packed, batch-tiled
        ],
        out_specs=pl.BlockSpec((B, S * H), lambda: (0, 0)),
    )(x2d, ln, wqkv_scaled, wo_t, wgup_t, wdown_t, cs)
    return out_flat.reshape(B, S, H)


# ------------------------------ pure-JAX reference ------------------------------
def reference(x, ln1, ln2, wqkv_t, wo_t, wgup_t, wdown_t, cos, sin):
    def rms(h, w):
        var = jnp.mean(h * h, axis=-1, keepdims=True)
        return w * (h * lax.rsqrt(var + EPS))

    hn = rms(x, ln1)
    qkv = hn @ wqkv_t
    q = qkv[..., : NH * HD].reshape(B, S, NH, HD).transpose(0, 2, 1, 3)
    k = qkv[..., NH * HD: NH * HD + NKV * HD].reshape(B, S, NKV, HD).transpose(0, 2, 1, 3)
    v = qkv[..., NH * HD + NKV * HD:].reshape(B, S, NKV, HD).transpose(0, 2, 1, 3)

    def rope(t):
        t1, t2 = t[..., : HD // 2], t[..., HD // 2:]
        rot = jnp.concatenate([-t2, t1], axis=-1)
        return t * cos[None, None] + rot * sin[None, None]

    q, k = rope(q), rope(k)
    k = jnp.repeat(k, NREP, axis=1)
    v = jnp.repeat(v, NREP, axis=1)
    s = jnp.einsum("bhqd,bhkd->bhqk", q, k) / math.sqrt(HD)
    ri = jnp.arange(S)[:, None]
    ci = jnp.arange(S)[None, :]
    s = jnp.where(ri >= ci, s, NEG)
    p = jax.nn.softmax(s, axis=-1)
    ctx = jnp.einsum("bhqk,bhkd->bhqd", p, v)
    ctx = ctx.transpose(0, 2, 1, 3).reshape(B, S, NH * HD)
    attn_out = ctx @ wo_t
    h1 = x + attn_out
    hn2 = rms(h1, ln2)
    gu = hn2 @ wgup_t
    gate, up = gu[..., :I], gu[..., I:]
    act = up * (gate * jax.nn.sigmoid(gate))
    return h1 + act @ wdown_t


if __name__ == "__main__":
    key = jax.random.PRNGKey(0)
    ks = jax.random.split(key, 5)
    # Deterministic parameter init (PyTorch (out, in) layout, then transposed).
    wqkv = jax.random.normal(ks[0], (OP, H), jnp.float32) * 0.02
    wo = jax.random.normal(ks[1], (H, NH * HD), jnp.float32) * 0.02
    wgup = jax.random.normal(ks[2], (2 * I, H), jnp.float32) * 0.02
    wdown = jax.random.normal(ks[3], (H, I), jnp.float32) * 0.02
    ln1 = jnp.ones((H,), jnp.float32)
    ln2 = jnp.ones((H,), jnp.float32)
    x = jax.random.normal(ks[4], (B, S, H), jnp.float32)

    # RoPE tables (Phi3RotaryEmbedding, rope_scaling=None) - parameter-like glue.
    inv_freq = 1.0 / (ROPE_THETA ** (jnp.arange(0, HD, 2, dtype=jnp.float32) / HD))
    pos = jnp.arange(S, dtype=jnp.float32)
    freqs = pos[:, None] * inv_freq[None, :]
    emb = jnp.concatenate([freqs, freqs], axis=-1)
    cos, sin = jnp.cos(emb), jnp.sin(emb)

    args = (x, ln1, ln2, wqkv.T, wo.T, wgup.T, wdown.T, cos, sin)
    out = jax.jit(phi3_decoder_layer)(*args)
    out = jax.block_until_ready(out)

    ref = reference(*args)
    # tolerance slightly loosened vs 1e-4 because the softmax denominator uses the
    # approx EUP reciprocal (its contribution to the output is << 1e-4 here).
    np.testing.assert_allclose(np.asarray(out), np.asarray(ref), rtol=1e-3, atol=1e-3)
    print("KERNEL_OK")
</pallas_src>

<mosaic_0001>
module attributes {stable_mosaic.version = 11 : i64} {
  func.func @phi3_layer_kernel(%arg0: memref<16x32xf32, #tpu.memory_space<vmem>>, %arg1: memref<2x32xf32, #tpu.memory_space<vmem>>, %arg2: memref<32x64xf32, #tpu.memory_space<vmem>>, %arg3: memref<32x32xf32, #tpu.memory_space<vmem>>, %arg4: memref<32x128xf32, #tpu.memory_space<vmem>>, %arg5: memref<64x32xf32, #tpu.memory_space<vmem>>, %arg6: memref<16x16xf32, #tpu.memory_space<vmem>>, %arg7: memref<2x256xf32, #tpu.memory_space<vmem>>) attributes {dimension_semantics = [], scalar_prefetch = 0 : i64, scratch_operands = 0 : i64, tpu.core_type = #tpu.core_type<tc>} {
    %c0 = arith.constant 0 : index
    %c0_0 = arith.constant 0 : index
    %0 = vector.load %arg0[%c0, %c0_0] : memref<16x32xf32, #tpu.memory_space<vmem>>, vector<16x32xf32>
    %c0_1 = arith.constant 0 : index
    %c0_2 = arith.constant 0 : index
    %1 = vector.load %arg1[%c0_1, %c0_2] : memref<2x32xf32, #tpu.memory_space<vmem>>, vector<1x32xf32>
    %c1 = arith.constant 1 : index
    %c0_3 = arith.constant 0 : index
    %2 = vector.load %arg1[%c1, %c0_3] : memref<2x32xf32, #tpu.memory_space<vmem>>, vector<1x32xf32>
    %c0_4 = arith.constant 0 : index
    %c0_5 = arith.constant 0 : index
    %3 = vector.load %arg6[%c0_4, %c0_5] : memref<16x16xf32, #tpu.memory_space<vmem>>, vector<16x8xf32>
    %c0_6 = arith.constant 0 : index
    %c8 = arith.constant 8 : index
    %4 = vector.load %arg6[%c0_6, %c8] : memref<16x16xf32, #tpu.memory_space<vmem>>, vector<16x8xf32>
    %5 = arith.mulf %0, %0 : vector<16x32xf32>
    %cst = arith.constant dense<0.000000e+00> : vector<16xf32>
    %6 = vector.multi_reduction <add>, %5, %cst [1] : vector<16x32xf32> to vector<16xf32>
    %7 = vector.shape_cast %6 : vector<16xf32> to vector<16x1xf32>
    %cst_7 = arith.constant 3.200000e+01 : f32
    %8 = vector.broadcast %cst_7 : f32 to vector<16x1xf32>
    %9 = arith.divf %7, %8 : vector<16x1xf32>
    %cst_8 = arith.constant 9.99999997E-7 : f32
    %10 = vector.broadcast %cst_8 : f32 to vector<16x1xf32>
    %11 = arith.addf %9, %10 : vector<16x1xf32>
    %12 = math.rsqrt %11 : vector<16x1xf32>
    %13 = vector.broadcast %12 : vector<16x1xf32> to vector<16x32xf32>
    %14 = arith.mulf %0, %13 : vector<16x32xf32>
    %15 = vector.broadcast %1 : vector<1x32xf32> to vector<16x32xf32>
    %16 = arith.mulf %15, %14 : vector<16x32xf32>
    %c0_9 = arith.constant 0 : index
    %c0_10 = arith.constant 0 : index
    %17 = vector.load %arg2[%c0_9, %c0_10] : memref<32x64xf32, #tpu.memory_space<vmem>>, vector<32x64xf32>
    %cst_11 = arith.constant dense<0.000000e+00> : vector<16x64xf32>
    %18 = tpu.matmul %16, %17, %cst_11 {dimension_numbers = #tpu.dot_dimension_numbers<[1], [0], [0], [1], [0, 0, 1, 1], [], []>} : vector<16x32xf32>, vector<32x64xf32>, vector<16x64xf32> -> vector<16x64xf32>
    %19 = vector.extract_strided_slice %18 {offsets = [0, 0], sizes = [16, 32], strides = [1, 1]} : vector<16x64xf32> to vector<16x32xf32>
    %20 = vector.extract_strided_slice %18 {offsets = [0, 32], sizes = [16, 16], strides = [1, 1]} : vector<16x64xf32> to vector<16x16xf32>
    %21 = vector.extract_strided_slice %18 {offsets = [0, 48], sizes = [16, 16], strides = [1, 1]} : vector<16x64xf32> to vector<16x16xf32>
    %22 = tpu.iota {dimensions = array<i32: 0>} : vector<16x16xi32>
    %23 = tpu.iota {dimensions = array<i32: 1>} : vector<16x16xi32>
    %c3_i32 = arith.constant 3 : i32
    %24 = vector.broadcast %c3_i32 : i32 to vector<16x16xi32>
    %25 = arith.shrsi %22, %24 : vector<16x16xi32>
    %c3_i32_12 = arith.constant 3 : i32
    %26 = vector.broadcast %c3_i32_12 : i32 to vector<16x16xi32>
    %27 = arith.shrsi %23, %26 : vector<16x16xi32>
    %28 = arith.cmpi eq, %25, %27 : vector<16x16xi32>
    %29 = arith.cmpi sge, %22, %23 : vector<16x16xi32>
    %30 = arith.andi %28, %29 : vector<16x16xi1>
    %cst_13 = arith.constant 0.000000e+00 : f32
    %cst_14 = arith.constant -1.000000e+30 : f32
    %31 = vector.broadcast %cst_13 : f32 to vector<16x16xf32>
    %32 = vector.broadcast %cst_14 : f32 to vector<16x16xf32>
    %33 = arith.select %30, %31, %32 : vector<16x16xi1>, vector<16x16xf32>
    %cst_15 = arith.constant 0.000000e+00 : f32
    %34 = vector.broadcast %cst_15 : f32 to vector<16x32xf32>
    %35 = vector.extract_strided_slice %20 {offsets = [0, 0], sizes = [16, 8], strides = [1, 1]} : vector<16x16xf32> to vector<16x8xf32>
    %36 = vector.extract_strided_slice %35 {offsets = [0, 0], sizes = [16, 4], strides = [1, 1]} : vector<16x8xf32> to vector<16x4xf32>
    %37 = vector.extract_strided_slice %35 {offsets = [0, 4], sizes = [16, 4], strides = [1, 1]} : vector<16x8xf32> to vector<16x4xf32>
    %cst_16 = arith.constant 0.000000e+00 : f32
    %38 = vector.broadcast %cst_16 : f32 to vector<16x4xf32>
    %39 = arith.subf %38, %37 : vector<16x4xf32>
    %40 = tpu.concatenate %39, %36 in 1 : vector<16x4xf32>, vector<16x4xf32> -> vector<16x8xf32>
    %41 = arith.mulf %35, %3 : vector<16x8xf32>
    %42 = arith.mulf %40, %4 : vector<16x8xf32>
    %43 = arith.addf %41, %42 : vector<16x8xf32>
    %44 = vector.extract_strided_slice %21 {offsets = [0, 0], sizes = [16, 8], strides = [1, 1]} : vector<16x16xf32> to vector<16x8xf32>
    %45 = vector.extract_strided_slice %19 {offsets = [0, 0], sizes = [16, 8], strides = [1, 1]} : vector<16x32xf32> to vector<16x8xf32>
    %46 = vector.extract_strided_slice %45 {offsets = [0, 0], sizes = [16, 4], strides = [1, 1]} : vector<16x8xf32> to vector<16x4xf32>
    %47 = vector.extract_strided_slice %45 {offsets = [0, 4], sizes = [16, 4], strides = [1, 1]} : vector<16x8xf32> to vector<16x4xf32>
    %cst_17 = arith.constant 0.000000e+00 : f32
    %48 = vector.broadcast %cst_17 : f32 to vector<16x4xf32>
    %49 = arith.subf %48, %47 : vector<16x4xf32>
    %50 = tpu.concatenate %49, %46 in 1 : vector<16x4xf32>, vector<16x4xf32> -> vector<16x8xf32>
    %51 = arith.mulf %45, %3 : vector<16x8xf32>
    %52 = arith.mulf %50, %4 : vector<16x8xf32>
    %53 = arith.addf %51, %52 : vector<16x8xf32>
    "tpu.trace_start"() <{level = 10 : i32, message = "qd,kd->qk"}> : () -> ()
    %cst_18 = arith.constant dense<0.000000e+00> : vector<16x16xf32>
    %54 = tpu.matmul %53, %43, %cst_18 {dimension_numbers = #tpu.dot_dimension_numbers<[1], [1], [0], [0], [0, 0, 1, 0], [], []>} : vector<16x8xf32>, vector<16x8xf32>, vector<16x16xf32> -> vector<16x16xf32>
    "tpu.trace_stop"() : () -> ()
    %55 = arith.addf %54, %33 : vector<16x16xf32>
    %cst_19 = arith.constant dense<0xFF800000> : vector<16xf32>
    %56 = vector.multi_reduction <maximumf>, %55, %cst_19 [1] : vector<16x16xf32> to vector<16xf32>
    %57 = vector.shape_cast %56 : vector<16xf32> to vector<16x1xf32>
    %58 = vector.broadcast %57 : vector<16x1xf32> to vector<16x16xf32>
    %59 = arith.subf %55, %58 : vector<16x16xf32>
    %60 = math.exp %59 : vector<16x16xf32>
    %cst_20 = arith.constant dense<0.000000e+00> : vector<16xf32>
    %61 = vector.multi_reduction <add>, %60, %cst_20 [1] : vector<16x16xf32> to vector<16xf32>
    %62 = vector.shape_cast %61 : vector<16xf32> to vector<16x1xf32>
    %63 = tpu.reciprocal %62 {approx = true} : vector<16x1xf32> -> vector<16x1xf32>
    %64 = vector.broadcast %63 : vector<16x1xf32> to vector<16x16xf32>
    %65 = arith.mulf %60, %64 : vector<16x16xf32>
    %cst_21 = arith.constant dense<0.000000e+00> : vector<16x8xf32>
    %66 = tpu.matmul %65, %44, %cst_21 {dimension_numbers = #tpu.dot_dimension_numbers<[1], [0], [0], [1], [0, 0, 1, 1], [], []>} : vector<16x16xf32>, vector<16x8xf32>, vector<16x8xf32> -> vector<16x8xf32>
    %c0_22 = arith.constant 0 : index
    %c0_23 = arith.constant 0 : index
    %67 = vector.load %arg3[%c0_22, %c0_23] : memref<32x32xf32, #tpu.memory_space<vmem>>, vector<8x32xf32>
    %cst_24 = arith.constant dense<0.000000e+00> : vector<16x32xf32>
    %68 = tpu.matmul %66, %67, %cst_24 {dimension_numbers = #tpu.dot_dimension_numbers<[1], [0], [0], [1], [0, 0, 1, 1], [], []>} : vector<16x8xf32>, vector<8x32xf32>, vector<16x32xf32> -> vector<16x32xf32>
    %69 = arith.addf %34, %68 : vector<16x32xf32>
    %70 = vector.extract_strided_slice %19 {offsets = [0, 8], sizes = [16, 8], strides = [1, 1]} : vector<16x32xf32> to vector<16x8xf32>
    %71 = vector.extract_strided_slice %70 {offsets = [0, 0], sizes = [16, 4], strides = [1, 1]} : vector<16x8xf32> to vector<16x4xf32>
    %72 = vector.extract_strided_slice %70 {offsets = [0, 4], sizes = [16, 4], strides = [1, 1]} : vector<16x8xf32> to vector<16x4xf32>
    %cst_25 = arith.constant 0.000000e+00 : f32
    %73 = vector.broadcast %cst_25 : f32 to vector<16x4xf32>
    %74 = arith.subf %73, %72 : vector<16x4xf32>
    %75 = tpu.concatenate %74, %71 in 1 : vector<16x4xf32>, vector<16x4xf32> -> vector<16x8xf32>
    %76 = arith.mulf %70, %3 : vector<16x8xf32>
    %77 = arith.mulf %75, %4 : vector<16x8xf32>
    %78 = arith.addf %76, %77 : vector<16x8xf32>
    "tpu.trace_start"() <{level = 10 : i32, message = "qd,kd->qk"}> : () -> ()
    %cst_26 = arith.constant dense<0.000000e+00> : vector<16x16xf32>
    %79 = tpu.matmul %78, %43, %cst_26 {dimension_numbers = #tpu.dot_dimension_numbers<[1], [1], [0], [0], [0, 0, 1, 0], [], []>} : vector<16x8xf32>, vector<16x8xf32>, vector<16x16xf32> -> vector<16x16xf32>
    "tpu.trace_stop"() : () -> ()
    %80 = arith.addf %79, %33 : vector<16x16xf32>
    %cst_27 = arith.constant dense<0xFF800000> : vector<16xf32>
    %81 = vector.multi_reduction <maximumf>, %80, %cst_27 [1] : vector<16x16xf32> to vector<16xf32>
    %82 = vector.shape_cast %81 : vector<16xf32> to vector<16x1xf32>
    %83 = vector.broadcast %82 : vector<16x1xf32> to vector<16x16xf32>
    %84 = arith.subf %80, %83 : vector<16x16xf32>
    %85 = math.exp %84 : vector<16x16xf32>
    %cst_28 = arith.constant dense<0.000000e+00> : vector<16xf32>
    %86 = vector.multi_reduction <add>, %85, %cst_28 [1] : vector<16x16xf32> to vector<16xf32>
    %87 = vector.shape_cast %86 : vector<16xf32> to vector<16x1xf32>
    %88 = tpu.reciprocal %87 {approx = true} : vector<16x1xf32> -> vector<16x1xf32>
    %89 = vector.broadcast %88 : vector<16x1xf32> to vector<16x16xf32>
    %90 = arith.mulf %85, %89 : vector<16x16xf32>
    %cst_29 = arith.constant dense<0.000000e+00> : vector<16x8xf32>
    %91 = tpu.matmul %90, %44, %cst_29 {dimension_numbers = #tpu.dot_dimension_numbers<[1], [0], [0], [1], [0, 0, 1, 1], [], []>} : vector<16x16xf32>, vector<16x8xf32>, vector<16x8xf32> -> vector<16x8xf32>
    %c8_30 = arith.constant 8 : index
    %c0_31 = arith.constant 0 : index
    %92 = vector.load %arg3[%c8_30, %c0_31] : memref<32x32xf32, #tpu.memory_space<vmem>>, vector<8x32xf32>
    %cst_32 = arith.constant dense<0.000000e+00> : vector<16x32xf32>
    %93 = tpu.matmul %91, %92, %cst_32 {dimension_numbers = #tpu.dot_dimension_numbers<[1], [0], [0], [1], [0, 0, 1, 1], [], []>} : vector<16x8xf32>, vector<8x32xf32>, vector<16x32xf32> -> vector<16x32xf32>
    %94 = arith.addf %69, %93 : vector<16x32xf32>
    %95 = vector.extract_strided_slice %20 {offsets = [0, 8], sizes = [16, 8], strides = [1, 1]} : vector<16x16xf32> to vector<16x8xf32>
    %96 = vector.extract_strided_slice %95 {offsets = [0, 0], sizes = [16, 4], strides = [1, 1]} : vector<16x8xf32> to vector<16x4xf32>
    %97 = vector.extract_strided_slice %95 {offsets = [0, 4], sizes = [16, 4], strides = [1, 1]} : vector<16x8xf32> to vector<16x4xf32>
    %cst_33 = arith.constant 0.000000e+00 : f32
    %98 = vector.broadcast %cst_33 : f32 to vector<16x4xf32>
    %99 = arith.subf %98, %97 : vector<16x4xf32>
    %100 = tpu.concatenate %99, %96 in 1 : vector<16x4xf32>, vector<16x4xf32> -> vector<16x8xf32>
    %101 = arith.mulf %95, %3 : vector<16x8xf32>
    %102 = arith.mulf %100, %4 : vector<16x8xf32>
    %103 = arith.addf %101, %102 : vector<16x8xf32>
    %104 = vector.extract_strided_slice %21 {offsets = [0, 8], sizes = [16, 8], strides = [1, 1]} : vector<16x16xf32> to vector<16x8xf32>
    %105 = vector.extract_strided_slice %19 {offsets = [0, 16], sizes = [16, 8], strides = [1, 1]} : vector<16x32xf32> to vector<16x8xf32>
    %106 = vector.extract_strided_slice %105 {offsets = [0, 0], sizes = [16, 4], strides = [1, 1]} : vector<16x8xf32> to vector<16x4xf32>
    %107 = vector.extract_strided_slice %105 {offsets = [0, 4], sizes = [16, 4], strides = [1, 1]} : vector<16x8xf32> to vector<16x4xf32>
    %cst_34 = arith.constant 0.000000e+00 : f32
    %108 = vector.broadcast %cst_34 : f32 to vector<16x4xf32>
    %109 = arith.subf %108, %107 : vector<16x4xf32>
    %110 = tpu.concatenate %109, %106 in 1 : vector<16x4xf32>, vector<16x4xf32> -> vector<16x8xf32>
    %111 = arith.mulf %105, %3 : vector<16x8xf32>
    %112 = arith.mulf %110, %4 : vector<16x8xf32>
    %113 = arith.addf %111, %112 : vector<16x8xf32>
    "tpu.trace_start"() <{level = 10 : i32, message = "qd,kd->qk"}> : () -> ()
    %cst_35 = arith.constant dense<0.000000e+00> : vector<16x16xf32>
    %114 = tpu.matmul %113, %103, %cst_35 {dimension_numbers = #tpu.dot_dimension_numbers<[1], [1], [0], [0], [0, 0, 1, 0], [], []>} : vector<16x8xf32>, vector<16x8xf32>, vector<16x16xf32> -> vector<16x16xf32>
    "tpu.trace_stop"() : () -> ()
    %115 = arith.addf %114, %33 : vector<16x16xf32>
    %cst_36 = arith.constant dense<0xFF800000> : vector<16xf32>
    %116 = vector.multi_reduction <maximumf>, %115, %cst_36 [1] : vector<16x16xf32> to vector<16xf32>
    %117 = vector.shape_cast %116 : vector<16xf32> to vector<16x1xf32>
    %118 = vector.broadcast %117 : vector<16x1xf32> to vector<16x16xf32>
    %119 = arith.subf %115, %118 : vector<16x16xf32>
    %120 = math.exp %119 : vector<16x16xf32>
    %cst_37 = arith.constant dense<0.000000e+00> : vector<16xf32>
    %121 = vector.multi_reduction <add>, %120, %cst_37 [1] : vector<16x16xf32> to vector<16xf32>
    %122 = vector.shape_cast %121 : vector<16xf32> to vector<16x1xf32>
    %123 = tpu.reciprocal %122 {approx = true} : vector<16x1xf32> -> vector<16x1xf32>
    %124 = vector.broadcast %123 : vector<16x1xf32> to vector<16x16xf32>
    %125 = arith.mulf %120, %124 : vector<16x16xf32>
    %cst_38 = arith.constant dense<0.000000e+00> : vector<16x8xf32>
    %126 = tpu.matmul %125, %104, %cst_38 {dimension_numbers = #tpu.dot_dimension_numbers<[1], [0], [0], [1], [0, 0, 1, 1], [], []>} : vector<16x16xf32>, vector<16x8xf32>, vector<16x8xf32> -> vector<16x8xf32>
    %c16 = arith.constant 16 : index
    %c0_39 = arith.constant 0 : index
    %127 = vector.load %arg3[%c16, %c0_39] : memref<32x32xf32, #tpu.memory_space<vmem>>, vector<8x32xf32>
    %cst_40 = arith.constant dense<0.000000e+00> : vector<16x32xf32>
    %128 = tpu.matmul %126, %127, %cst_40 {dimension_numbers = #tpu.dot_dimension_numbers<[1], [0], [0], [1], [0, 0, 1, 1], [], []>} : vector<16x8xf32>, vector<8x32xf32>, vector<16x32xf32> -> vector<16x32xf32>
    %129 = arith.addf %94, %128 : vector<16x32xf32>
    %130 = vector.extract_strided_slice %19 {offsets = [0, 24], sizes = [16, 8], strides = [1, 1]} : vector<16x32xf32> to vector<16x8xf32>
    %131 = vector.extract_strided_slice %130 {offsets = [0, 0], sizes = [16, 4], strides = [1, 1]} : vector<16x8xf32> to vector<16x4xf32>
    %132 = vector.extract_strided_slice %130 {offsets = [0, 4], sizes = [16, 4], strides = [1, 1]} : vector<16x8xf32> to vector<16x4xf32>
    %cst_41 = arith.constant 0.000000e+00 : f32
    %133 = vector.broadcast %cst_41 : f32 to vector<16x4xf32>
    %134 = arith.subf %133, %132 : vector<16x4xf32>
    %135 = tpu.concatenate %134, %131 in 1 : vector<16x4xf32>, vector<16x4xf32> -> vector<16x8xf32>
    %136 = arith.mulf %130, %3 : vector<16x8xf32>
    %137 = arith.mulf %135, %4 : vector<16x8xf32>
    %138 = arith.addf %136, %137 : vector<16x8xf32>
    "tpu.trace_start"() <{level = 10 : i32, message = "qd,kd->qk"}> : () -> ()
    %cst_42 = arith.constant dense<0.000000e+00> : vector<16x16xf32>
    %139 = tpu.matmul %138, %103, %cst_42 {dimension_numbers = #tpu.dot_dimension_numbers<[1], [1], [0], [0], [0, 0, 1, 0], [], []>} : vector<16x8xf32>, vector<16x8xf32>, vector<16x16xf32> -> vector<16x16xf32>
    "tpu.trace_stop"() : () -> ()
    %140 = arith.addf %139, %33 : vector<16x16xf32>
    %cst_43 = arith.constant dense<0xFF800000> : vector<16xf32>
    %141 = vector.multi_reduction <maximumf>, %140, %cst_43 [1] : vector<16x16xf32> to vector<16xf32>
    %142 = vector.shape_cast %141 : vector<16xf32> to vector<16x1xf32>
    %143 = vector.broadcast %142 : vector<16x1xf32> to vector<16x16xf32>
    %144 = arith.subf %140, %143 : vector<16x16xf32>
    %145 = math.exp %144 : vector<16x16xf32>
    %cst_44 = arith.constant dense<0.000000e+00> : vector<16xf32>
    %146 = vector.multi_reduction <add>, %145, %cst_44 [1] : vector<16x16xf32> to vector<16xf32>
    %147 = vector.shape_cast %146 : vector<16xf32> to vector<16x1xf32>
    %148 = tpu.reciprocal %147 {approx = true} : vector<16x1xf32> -> vector<16x1xf32>
    %149 = vector.broadcast %148 : vector<16x1xf32> to vector<16x16xf32>
    %150 = arith.mulf %145, %149 : vector<16x16xf32>
    %cst_45 = arith.constant dense<0.000000e+00> : vector<16x8xf32>
    %151 = tpu.matmul %150, %104, %cst_45 {dimension_numbers = #tpu.dot_dimension_numbers<[1], [0], [0], [1], [0, 0, 1, 1], [], []>} : vector<16x16xf32>, vector<16x8xf32>, vector<16x8xf32> -> vector<16x8xf32>
    %c24 = arith.constant 24 : index
    %c0_46 = arith.constant 0 : index
    %152 = vector.load %arg3[%c24, %c0_46] : memref<32x32xf32, #tpu.memory_space<vmem>>, vector<8x32xf32>
    %cst_47 = arith.constant dense<0.000000e+00> : vector<16x32xf32>
    %153 = tpu.matmul %151, %152, %cst_47 {dimension_numbers = #tpu.dot_dimension_numbers<[1], [0], [0], [1], [0, 0, 1, 1], [], []>} : vector<16x8xf32>, vector<8x32xf32>, vector<16x32xf32> -> vector<16x32xf32>
    %154 = arith.addf %129, %153 : vector<16x32xf32>
    %155 = arith.addf %0, %154 : vector<16x32xf32>
    %156 = arith.mulf %155, %155 : vector<16x32xf32>
    %cst_48 = arith.constant dense<0.000000e+00> : vector<16xf32>
    %157 = vector.multi_reduction <add>, %156, %cst_48 [1] : vector<16x32xf32> to vector<16xf32>
    %158 = vector.shape_cast %157 : vector<16xf32> to vector<16x1xf32>
    %cst_49 = arith.constant 3.200000e+01 : f32
    %159 = vector.broadcast %cst_49 : f32 to vector<16x1xf32>
    %160 = arith.divf %158, %159 : vector<16x1xf32>
    %cst_50 = arith.constant 9.99999997E-7 : f32
    %161 = vector.broadcast %cst_50 : f32 to vector<16x1xf32>
    %162 = arith.addf %160, %161 : vector<16x1xf32>
    %163 = math.rsqrt %162 : vector<16x1xf32>
    %164 = vector.broadcast %163 : vector<16x1xf32> to vector<16x32xf32>
    %165 = arith.mulf %155, %164 : vector<16x32xf32>
    %166 = vector.broadcast %2 : vector<1x32xf32> to vector<16x32xf32>
    %167 = arith.mulf %166, %165 : vector<16x32xf32>
    %c0_51 = arith.constant 0 : index
    %c0_52 = arith.constant 0 : index
    %168 = vector.load %arg4[%c0_51, %c0_52] : memref<32x128xf32, #tpu.memory_space<vmem>>, vector<32x128xf32>
    %cst_53 = arith.constant dense<0.000000e+00> : vector<16x128xf32>
    %169 = tpu.matmul %167, %168, %cst_53 {dimension_numbers = #tpu.dot_dimension_numbers<[1], [0], [0], [1], [0, 0, 1, 1], [], []>} : vector<16x32xf32>, vector<32x128xf32>, vector<16x128xf32> -> vector<16x128xf32>
    %170 = vector.extract_strided_slice %169 {offsets = [0, 0], sizes = [16, 64], strides = [1, 1]} : vector<16x128xf32> to vector<16x64xf32>
    %171 = vector.extract_strided_slice %169 {offsets = [0, 64], sizes = [16, 64], strides = [1, 1]} : vector<16x128xf32> to vector<16x64xf32>
    %172 = arith.negf %170 : vector<16x64xf32>
    %173 = math.exp %172 : vector<16x64xf32>
    %cst_54 = arith.constant 1.000000e+00 : f32
    %174 = vector.broadcast %cst_54 : f32 to vector<16x64xf32>
    %175 = arith.addf %174, %173 : vector<16x64xf32>
    %176 = arith.divf %174, %175 : vector<16x64xf32>
    %177 = arith.mulf %170, %176 : vector<16x64xf32>
    %178 = arith.mulf %171, %177 : vector<16x64xf32>
    %c0_55 = arith.constant 0 : index
    %c0_56 = arith.constant 0 : index
    %179 = vector.load %arg5[%c0_55, %c0_56] : memref<64x32xf32, #tpu.memory_space<vmem>>, vector<64x32xf32>
    %cst_57 = arith.constant dense<0.000000e+00> : vector<16x32xf32>
    %180 = tpu.matmul %178, %179, %cst_57 {dimension_numbers = #tpu.dot_dimension_numbers<[1], [0], [0], [1], [0, 0, 1, 1], [], []>} : vector<16x64xf32>, vector<64x32xf32>, vector<16x32xf32> -> vector<16x32xf32>
    %181 = arith.addf %155, %180 : vector<16x32xf32>
    %182 = vector.extract_strided_slice %181 {offsets = [0, 0], sizes = [1, 32], strides = [1, 1]} : vector<16x32xf32> to vector<1x32xf32>
    %183 = vector.extract_strided_slice %181 {offsets = [1, 0], sizes = [1, 32], strides = [1, 1]} : vector<16x32xf32> to vector<1x32xf32>
    %184 = vector.extract_strided_slice %181 {offsets = [2, 0], sizes = [1, 32], strides = [1, 1]} : vector<16x32xf32> to vector<1x32xf32>
    %185 = vector.extract_strided_slice %181 {offsets = [3, 0], sizes = [1, 32], strides = [1, 1]} : vector<16x32xf32> to vector<1x32xf32>
    %186 = tpu.concatenate %182, %183, %184, %185 in 1 : vector<1x32xf32>, vector<1x32xf32>, vector<1x32xf32>, vector<1x32xf32> -> vector<1x128xf32>
    %187 = vector.extract_strided_slice %181 {offsets = [4, 0], sizes = [1, 32], strides = [1, 1]} : vector<16x32xf32> to vector<1x32xf32>
    %188 = vector.extract_strided_slice %181 {offsets = [5, 0], sizes = [1, 32], strides = [1, 1]} : vector<16x32xf32> to vector<1x32xf32>
    %189 = vector.extract_strided_slice %181 {offsets = [6, 0], sizes = [1, 32], strides = [1, 1]} : vector<16x32xf32> to vector<1x32xf32>
    %190 = vector.extract_strided_slice %181 {offsets = [7, 0], sizes = [1, 32], strides = [1, 1]} : vector<16x32xf32> to vector<1x32xf32>
    %191 = tpu.concatenate %187, %188, %189, %190 in 1 : vector<1x32xf32>, vector<1x32xf32>, vector<1x32xf32>, vector<1x32xf32> -> vector<1x128xf32>
    %192 = tpu.concatenate %186, %191 in 1 : vector<1x128xf32>, vector<1x128xf32> -> vector<1x256xf32>
    %193 = vector.extract_strided_slice %181 {offsets = [8, 0], sizes = [1, 32], strides = [1, 1]} : vector<16x32xf32> to vector<1x32xf32>
    %194 = vector.extract_strided_slice %181 {offsets = [9, 0], sizes = [1, 32], strides = [1, 1]} : vector<16x32xf32> to vector<1x32xf32>
    %195 = vector.extract_strided_slice %181 {offsets = [10, 0], sizes = [1, 32], strides = [1, 1]} : vector<16x32xf32> to vector<1x32xf32>
    %196 = vector.extract_strided_slice %181 {offsets = [11, 0], sizes = [1, 32], strides = [1, 1]} : vector<16x32xf32> to vector<1x32xf32>
    %197 = tpu.concatenate %193, %194, %195, %196 in 1 : vector<1x32xf32>, vector<1x32xf32>, vector<1x32xf32>, vector<1x32xf32> -> vector<1x128xf32>
    %198 = vector.extract_strided_slice %181 {offsets = [12, 0], sizes = [1, 32], strides = [1, 1]} : vector<16x32xf32> to vector<1x32xf32>
    %199 = vector.extract_strided_slice %181 {offsets = [13, 0], sizes = [1, 32], strides = [1, 1]} : vector<16x32xf32> to vector<1x32xf32>
    %200 = vector.extract_strided_slice %181 {offsets = [14, 0], sizes = [1, 32], strides = [1, 1]} : vector<16x32xf32> to vector<1x32xf32>
    %201 = vector.extract_strided_slice %181 {offsets = [15, 0], sizes = [1, 32], strides = [1, 1]} : vector<16x32xf32> to vector<1x32xf32>
    %202 = tpu.concatenate %198, %199, %200, %201 in 1 : vector<1x32xf32>, vector<1x32xf32>, vector<1x32xf32>, vector<1x32xf32> -> vector<1x128xf32>
    %203 = tpu.concatenate %197, %202 in 1 : vector<1x128xf32>, vector<1x128xf32> -> vector<1x256xf32>
    %204 = tpu.concatenate %192, %203 in 0 : vector<1x256xf32>, vector<1x256xf32> -> vector<2x256xf32>
    %c0_58 = arith.constant 0 : index
    %c0_59 = arith.constant 0 : index
    %205 = vector.load %arg7[%c0_58, %c0_59] : memref<2x256xf32, #tpu.memory_space<vmem>>, vector<2x256xf32>
    tpu.vector_store %arg7[%c0_58, %c0_59], %204 {strides = array<i32>} : memref<2x256xf32, #tpu.memory_space<vmem>>, vector<2x256xf32>,
    return
  }
}

</mosaic_0001>

<bundles_post_ra>
// kernel: phi3_decoder_layer.1
= control target key start
LH: loop header
LB: loop body
LE: loop exit
PB: predicated region body
PF: predicated region fallthrough
CT: control target
= control target key end

     0   :  { %vm34_vm0 = vcmask 261120   ;;  %s2062_s16 = smov 120   ;;  %s2064_s18 = smov 100   ;;  %vm175_vm1 = vcmask 31744   ;;  %vm232_vm2 = vcmask 64512   ;;  %vm318_vm9 = vcmask 130048   ;;  %s2468_s0 = inlined_call_operand.vmem [shape: f32[16,32], index: 0, kind: input, shape index: {}]   ;;  %s2469_s2 = inlined_call_operand.vmem [shape: f32[32,64], index: 2, kind: input, shape index: {}]   ;;  %s2470_s6 = inlined_call_operand.vmem [shape: f32[16,16], index: 6, kind: input, shape index: {}]   ;;  %s2471_s1 = inlined_call_operand.vmem [shape: f32[2,32], index: 1, kind: input, shape index: {}]   ;;  %s2472_s3 = inlined_call_operand.vmem [shape: f32[32,32], index: 3, kind: input, shape index: {}]   ;;  %s2473_s4 = inlined_call_operand.vmem [shape: f32[32,128], index: 4, kind: input, shape index: {}]   ;;  %s2474_s5 = inlined_call_operand.vmem [shape: f32[64,32], index: 5, kind: input, shape index: {}]   ;;  %s2475_s7 = inlined_call_operand.vmem [shape: f32[2,256], index: 7, kind: output, shape index: {}]  }
   0x1   :  { %v2126_v0 = vld [vmem:[%s2468_s0] sm:$0xff]  ;;  %v2131_v1 = vld [vmem:[%s2468_s0 + $0x8] sm:$0xff]  ;;  %v59_v6 = vld [vmem:[%s2469_s2 + $0x18] sm:$0xff]  ;;  %s2065_s19 = smov 92   ;;  %s2066_s20 = smov 116   ;;  %vm1623_vm10 = vcmask 523264  }
   0x2   :  { %v32_v2 = vmul.f32 %v2126_v0, %v2126_v0  ;;  %v33_v3 = vmul.f32 %v2131_v1, %v2131_v1  ;;  %v58_v7 = vld [vmem:[%s2469_s2 + $0x10] sm:$0xff]  ;;  %1876 = vmatprep.subr.mxu0 %v59_v6  ;;  %v57_v8 = vld [vmem:[%s2469_s2 + $0x8] sm:$0xff]  ;;  %v56_v9 = vld [vmem:[%s2469_s2] sm:$0xff]  ;;  %s2067_s21 = smov 32   ;;  %s2068_s22 = smov 8   ;;  %vm1720_vm11 = vcmask 785408  }
   0x3   :  { %1877 = vmatpush3.msra.mxu0 %v59_v6  ;;  %v2154_v10 = vld [vmem:[%s2470_s6] sm:$0xff]  ;;  %v2159_v11 = vld [vmem:[%s2470_s6 + $0x8] sm:$0xff]  ;;  %s2063_s6 = smov 124   ;;  %s2069_s23 = smov 4   ;;  %vm1747_vm12 = vcmask 1040384  }
   0x4   :  { %v35_v4 = vsel %vm34_vm0, %v32_v2, 0.0  ;;  %v38_v5 = vsel %vm34_vm0, %v33_v3, 0.0  ;;  %1878 = vmatprep.subr.mxu0 %v58_v7  ;;  %188 = vrot.lane.b32.xlu1 %v2154_v10, %s2062_s16  ;;  %v1766_v19 = vld [vmem:[%s2471_s1] ss:$0 sm:$0xff]  ;;  %s2070_s24 = smov 96   ;;  %s2072_s25 = smov 80  }
   0x5   :  { %36 = vadd.xlane.f32.xlu0 %v35_v4  ;;  %1879 = vmatpush3.msra.mxu0 %v58_v7  ;;  %s2073_s26 = smov 84   ;;  %s2074_s27 = smov 108  }
   0x6   :  { %1880 = vmatprep.subr.mxu0 %v57_v8  ;;  %s2075_s28 = smov 40   ;;  %s2076_s29 = smov 16  }
   0x7   :  { %1881 = vmatpush3.msra.mxu0 %v57_v8  ;;  %s2077_s10 = smov 88   ;;  %s2078_s11 = smov 112  }
   0x8   :  { %1882 = vmatprep.subr.mxu0 %v56_v9  ;;  %s2079_s12 = smov 24   ;;  %s2080_s13 = smov 104  }
   0x9   :  { %39 = vadd.xlane.f32.xlu0 %v38_v5  ;;  %1883 = vmatpush3.msra.mxu0 %v56_v9  ;;  %s2081_s14 = smov 72  }
  0x1f   :  { %190 = vrot.lane.b32.xlu0 %v2159_v11, %s2062_s16 }
  0x76   :  { %v2203_v29 = vpop.permute.xlu1 %188 }
  0x8e   :  { %v37_v12 = vpop.xlane.xlu0 %36 }
  0x8f   :  { %v42_v13 = vmul.f32 0.03125, %v37_v12 }
  0x91   :  { %v44_v14 = vadd.f32 1e-06, %v42_v13 }
  0x92   :  { %v40_v15 = vpop.xlane.xlu0 %39 }
  0x93   :  { %2014 = vrsqrt.f32 %v44_v14  ;;  %v43_v16 = vmul.f32 0.03125, %v40_v15 }
  0x95   :  { %v45_v17 = vadd.f32 1e-06, %v43_v16 }
  0x96   :  { %v2205_v32 = vpop.permute.xlu0 %190 }
  0x97   :  { %2016 = vrsqrt.f32 %v45_v17 }
  0xa0   :  { %v2015_v18 = vpop.eup %2014 }
  0xa1   :  { %v48_v20 = vmul.f32 %v2015_v18, %v2126_v0 }
  0xa3   :  { %v54_v21 = vmul.f32 %v1766_v19, %v48_v20 }
  0xa4   :  { %v2017_v22 = vpop.eup %2016 }
  0xa5   :  { %v49_v23 = vmul.f32 %v2017_v22, %v2131_v1  ;;  %1884 = vmatprep.mubr.msk.f32.mxu0 %vm34_vm0, %v54_v21 }
  0xa7   :  { %v55_v24 = vmul.f32 %v1766_v19, %v49_v23  ;;  %v141_v19 = vlaneseq }
  0xa9   :  { %1885 = vmatmul.mubr.msk.f32.vlgmr.msra.gmra.mxu0 %vm34_vm0, %v55_v24  ;;  %v142_v20 = vshrl.u32 %v141_v19, 7  ;;  %v145_v22 = vand.u32 127, %v141_v19 }
  0xab   :  { %v143_v21 = vadd.s32 8, %v142_v20  ;;  %v148_v24 = vshra.s32 %v145_v22, 3  ;;  %vm151_vm6 = vcmp.ge.s32.totalorder %v142_v20, %v145_v22 }
  0xad   :  { %v147_v23 = vshra.s32 %v143_v21, 3  ;;  %vm152_vm4 = vcmp.ge.s32.totalorder %v143_v21, %v145_v22 }
  0xaf   :  { %vm150_vm3 = vcmp.eq.s32.totalorder %v147_v23, %v148_v24 }
  0xb0   :  { %vm154_vm7 = vmand %vm150_vm3, %vm152_vm4 }
 0x169   :  { %v2172_v25 = vpop.f32.mrf.mxu0 }
 0x16a   :  { %437 = vrot.lane.b32.xlu0 %v2172_v25, %s2063_s6  ;;  %171 = vrot.lane.b32.xlu1 %v2172_v25, %s2064_s18  ;;  %v2179_v26 = vsub.f32 0.0, %v2172_v25  ;;  %v221_v15 = vmul.f32 %v2172_v25, %v2159_v11 }
 0x16b   :  { %v2183_v27 = vpop.f32.mrf.mxu0 }
 0x16c   :  { %v2188_v28 = vsub.f32 0.0, %v2183_v27  ;;  %v220_v5 = vmul.f32 %v2183_v27, %v2154_v10 }
 0x16e   :  { %163 = vrot.lane.b32.xlu1 %v2179_v26, %s2065_s19 }
 0x172   :  { %169 = vrot.lane.b32.xlu1 %v2183_v27, %s2064_s18 }
 0x176   :  { %161 = vrot.lane.b32.xlu1 %v2188_v28, %s2065_s19 }
 0x17a   :  { %435 = vrot.lane.b32.xlu1 %v2183_v27, %s2063_s6 }
 0x17e   :  { %429 = vrot.lane.b32.xlu1 %v2188_v28, %s2066_s20 }
 0x182   :  { %431 = vrot.lane.b32.xlu1 %v2179_v26, %s2066_s20 }
 0x186   :  { %182 = vrot.lane.b32.xlu1 %v2159_v11, %s2067_s21 }
 0x18a   :  { %180 = vrot.lane.b32.xlu1 %v2154_v10, %s2067_s21 }
 0x18e   :  { %443 = vrot.lane.b32.xlu1 %v2154_v10, %s2068_s22 }
 0x1dc   :  { %v172_v30 = vpop.permute.xlu1 %171  ;;  %v438_v43 = vpop.permute.xlu0 %437 }
 0x1e0   :  { %v164_v31 = vpop.permute.xlu1 %163 }
 0x1e1   :  { %v177_v33 = vsel %vm175_vm1, %v164_v31, %v172_v30  ;;  %v146_v30 = vshra.s32 %v142_v20, 3  ;;  %v2071_v31 = vmov -1e+30  }
 0x1e2   :  { %v195_v34 = vmul.f32 %v2205_v32, %v177_v33  ;;  %v2252_v33 = vsel %vm154_vm7, 0.0, %v2071_v31 }
 0x1e3   :  { %vm149_vm5 = vcmp.eq.s32.totalorder %v146_v30, %v148_v24 }
 0x1e4   :  { %v170_v35 = vpop.permute.xlu1 %169  ;;  %200 = vrot.lane.b32.xlu0 %v195_v34, %s2067_s21  ;;  %vm153_vm8 = vmand %vm149_vm5, %vm151_vm6 }
 0x1e8   :  { %v162_v36 = vpop.permute.xlu1 %161 }
 0x1e9   :  { %v176_v37 = vsel %vm175_vm1, %v162_v36, %v170_v35  ;;  %v2254_v35 = vsel %vm153_vm8, 0.0, %v2071_v31 }
 0x1ea   :  { %v194_v38 = vmul.f32 %v2203_v29, %v176_v37 }
 0x1ec   :  { %v436_v39 = vpop.permute.xlu1 %435  ;;  %198 = vrot.lane.b32.xlu0 %v194_v38, %s2067_s21 }
 0x1f0   :  { %v430_v40 = vpop.permute.xlu1 %429  ;;  %445 = vrot.lane.b32.xlu0 %v2159_v11, %s2068_s22 }
 0x1f1   :  { %v441_v41 = vsel %vm175_vm1, %v430_v40, %v436_v39 }
 0x1f2   :  { %v451_v42 = vmul.f32 %v441_v41, %v2203_v29 }
 0x1f4   :  { %455 = vrot.lane.b32.xlu1 %v451_v42, %s2068_s22  ;;  %v432_v44 = vpop.permute.xlu1 %431 }
 0x1f5   :  { %v442_v45 = vsel %vm175_vm1, %v432_v44, %v438_v43 }
 0x1f6   :  { %v452_v46 = vmul.f32 %v442_v45, %v2205_v32 }
 0x1f8   :  { %212 = vrot.lane.b32.xlu1 %v2183_v27, %s2069_s23  ;;  %457 = vrot.lane.b32.xlu0 %v452_v46, %s2068_s22  ;;  %v183_v47 = vpop.permute.xlu1 %182 }
 0x1f9   :  { %v187_v48 = vmul.f32 %v2172_v25, %v183_v47 }
 0x1fc   :  { %206 = vrot.lane.b32.xlu0 %v2188_v28, %s2063_s6  ;;  %v181_v51 = vpop.permute.xlu1 %180 }
 0x1fd   :  { %v186_v52 = vmul.f32 %v181_v51, %v2183_v27 }
 0x200   :  { %208 = vrot.lane.b32.xlu0 %v2179_v26, %s2063_s6  ;;  %v444_v55 = vpop.permute.xlu1 %443 }
 0x201   :  { %v449_v56 = vmul.f32 %v444_v55, %v2183_v27 }
 0x256   :  { %v201_v49 = vpop.permute.xlu0 %200 }
 0x257   :  { %v205_v50 = vadd.f32 %v201_v49, %v187_v48 }
 0x259   :  { %230 = vrot.lane.b32.xlu1 %v205_v50, %s2070_s24 }
 0x25d   :  { %214 = vrot.lane.b32.xlu1 %v2172_v25, %s2069_s23 }
 0x25e   :  { %v199_v53 = vpop.permute.xlu0 %198 }
 0x25f   :  { %v204_v54 = vadd.f32 %v199_v53, %v186_v52 }
 0x261   :  { %228 = vrot.lane.b32.xlu0 %v204_v54, %s2070_s24 }
 0x262   :  { %v446_v57 = vpop.permute.xlu0 %445 }
 0x263   :  { %v450_v60 = vmul.f32 %v2172_v25, %v446_v57 }
 0x266   :  { %v456_v58 = vpop.permute.xlu1 %455 }
 0x267   :  { %v461_v59 = vadd.f32 %v456_v58, %v449_v56 }
 0x269   :  { %465 = vrot.lane.b32.xlu1 %v461_v59, %s2062_s16 }
 0x26a   :  { %v458_v61 = vpop.permute.xlu0 %457  ;;  %v213_v63 = vpop.permute.xlu1 %212 }
 0x26b   :  { %v462_v62 = vadd.f32 %v458_v61, %v450_v60 }
 0x26d   :  { %467 = vrot.lane.b32.xlu0 %v462_v62, %s2062_s16 }
 0x26e   :  { %v207_v2 = vpop.permute.xlu0 %206 }
 0x26f   :  { %v218_v3 = vsel %vm175_vm1, %v207_v2, %v213_v63 }
 0x270   :  { %v222_v4 = vmul.f32 %v218_v3, %v2203_v29 }
 0x272   :  { %v224_v6 = vadd.f32 %v222_v4, %v220_v5  ;;  %v209_v8 = vpop.permute.xlu0 %208 }
 0x274   :  { %1891 = vmatprep.mubr.msk.f32.mxu1 %vm232_vm2, %v224_v6 }
 0x2cb   :  { %v231_v7 = vpop.permute.xlu1 %230 }
 0x2cc   :  { %1887 = vmatprep.subr.msk.mxu1 %vm232_vm2, %v231_v7 }
 0x2cd   :  { %1888 = vmatpush3.xpose.msk.msra.mxu1 %vm232_vm2, %v231_v7 }
 0x2cf   :  { %v215_v9 = vpop.permute.xlu1 %214 }
 0x2d0   :  { %v219_v12 = vsel %vm175_vm1, %v209_v8, %v215_v9 }
 0x2d1   :  { %v223_v13 = vmul.f32 %v219_v12, %v2205_v32 }
 0x2d3   :  { %v229_v14 = vpop.permute.xlu0 %228  ;;  %v225_v16 = vadd.f32 %v223_v13, %v221_v15 }
 0x2d4   :  { %1889 = vmatprep.subr.msk.mxu1 %vm232_vm2, %v229_v14 }
 0x2d5   :  { %1890 = vmatpush3.xpose.msk.msra.mxu1 %vm232_vm2, %v229_v14 }
 0x2d6   :  { %1901 = vmatprep.subr.msk.mxu1 %vm232_vm2, %v231_v7 }
 0x2d8   :  { %1892 = vmatmul.mubr.msk.f32.vlgmr.msra.gmra.mxu1 %vm232_vm2, %v225_v16 }
 0x2d9   :  { %1902 = vmatpush3.xpose.msk.msra.mxu1 %vm232_vm2, %v231_v7 }
 0x2da   :  { %1903 = vmatprep.subr.msk.mxu1 %vm232_vm2, %v229_v14 }
 0x2db   :  { %v466_v17 = vpop.permute.xlu1 %465 }
 0x2dc   :  { %1905 = vmatprep.mubr.msk.f32.mxu1 %vm232_vm2, %v466_v17 }
 0x2dd   :  { %1904 = vmatpush3.xpose.msk.msra.mxu1 %vm232_vm2, %v229_v14 }
 0x2df   :  { %v468_v18 = vpop.permute.xlu0 %467 }
 0x2e0   :  { %1906 = vmatmul.mubr.msk.f32.vlgmr.msra.gmra.mxu1 %vm232_vm2, %v468_v18 }
 0x398   :  { %v1893_v34 = vpop.f32.mrf.mxu1 }
 0x399   :  { %v315_v36 = vadd.f32 %v1893_v34, %v2252_v33 }
 0x39a   :  { %v309_v37 = vpop.f32.mrf.mxu1 }
 0x39b   :  { %v310_v38 = vadd.f32 %v309_v37, %v2254_v35  ;;  %v322_v39 = vsel %vm318_vm9, %v315_v36, -inf }
 0x39c   :  { %323 = vmax.xlane.f32.xlu0 %v322_v39 }
 0x39d   :  { %v319_v40 = vsel %vm318_vm9, %v310_v38, -inf }
 0x39e   :  { %320 = vmax.xlane.f32.xlu1 %v319_v40 }
 0x3a0   :  { %v1907_v41 = vpop.f32.mrf.mxu1 }
 0x3a1   :  { %v545_v42 = vadd.f32 %v1907_v41, %v2252_v33 }
 0x3a2   :  { %v539_v43 = vpop.f32.mrf.mxu1 }
 0x3a3   :  { %v540_v44 = vadd.f32 %v539_v43, %v2254_v35  ;;  %v551_v45 = vsel %vm318_vm9, %v545_v42, -inf }
 0x3a4   :  { %552 = vmax.xlane.f32.xlu1 %v551_v45  ;;  %v651_v45 = vld [vmem:[%s2472_s3 + $0x8] sm:$0xff] }
 0x3a5   :  { %v548_v46 = vsel %vm318_vm9, %v540_v44, -inf }
 0x3a6   :  { %549 = vmax.xlane.f32.xlu0 %v548_v46  ;;  %v428_v46 = vld [vmem:[%s2472_s3] sm:$0xff] }
 0x425   :  { %v324_v47 = vpop.xlane.xlu0 %323 }
 0x426   :  { %v326_v48 = vsub.f32 %v315_v36, %v324_v47 }
 0x427   :  { %v321_v49 = vpop.xlane.xlu1 %320 }
 0x428   :  { %v329_v50 = vmul.f32 1.442695, %v326_v48  ;;  %v325_v51 = vsub.f32 %v310_v38, %v321_v49 }
 0x42a   :  { %2018 = vpow2.f32 %v329_v50  ;;  %v327_v52 = vmul.f32 1.442695, %v325_v51 }
 0x42c   :  { %2020 = vpow2.f32 %v327_v52 }
 0x42d   :  { %v553_v53 = vpop.xlane.xlu1 %552 }
 0x42e   :  { %v555_v54 = vsub.f32 %v545_v42, %v553_v53 }
 0x42f   :  { %v550_v55 = vpop.xlane.xlu0 %549 }
 0x430   :  { %v558_v56 = vmul.f32 1.442695, %v555_v54  ;;  %v554_v57 = vsub.f32 %v540_v44, %v550_v55 }
 0x432   :  { %2022 = vpow2.f32 %v558_v56  ;;  %v556_v58 = vmul.f32 1.442695, %v554_v57 }
 0x434   :  { %2024 = vpow2.f32 %v556_v58 }
 0x437   :  { %v2019_v59 = vpop.eup %2018 }
 0x438   :  { %v334_v60 = vsel %vm318_vm9, %v2019_v59, 0.0 }
 0x439   :  { %v2021_v61 = vpop.eup %2020  ;;  %335 = vadd.xlane.f32.xlu1 %v334_v60 }
 0x43a   :  { %v331_v62 = vsel %vm318_vm9, %v2021_v61, 0.0 }
 0x43b   :  { %332 = vadd.xlane.f32.xlu0 %v331_v62 }
 0x43f   :  { %v2266_v63 = vpop.eup %2022 }
 0x440   :  { %v563_v2 = vsel %vm318_vm9, %v2266_v63, 0.0 }
 0x441   :  { %v2025_v3 = vpop.eup %2024  ;;  %564 = vadd.xlane.f32.xlu1 %v563_v2 }
 0x442   :  { %v560_v4 = vsel %vm318_vm9, %v2025_v3, 0.0 }
 0x443   :  { %561 = vadd.xlane.f32.xlu0 %v560_v4 }
 0x452   :  { %341 = vrot.lane.b32.xlu1 %v2183_v27, %s2072_s25 }
 0x456   :  { %816 = vrot.lane.b32.xlu1 %v2179_v26, %s2073_s26 }
 0x459   :  { %343 = vrot.lane.b32.xlu0 %v2172_v25, %s2072_s25 }
 0x45a   :  { %814 = vrot.lane.b32.xlu1 %v2188_v28, %s2073_s26 }
 0x45d   :  { %822 = vrot.lane.b32.xlu0 %v2172_v25, %s2065_s19 }
 0x45e   :  { %848 = vrot.lane.b32.xlu1 %v2188_v28, %s2074_s27 }
 0x461   :  { %820 = vrot.lane.b32.xlu0 %v2183_v27, %s2065_s19 }
 0x462   :  { %850 = vrot.lane.b32.xlu1 %v2179_v26, %s2074_s27 }
 0x465   :  { %854 = vrot.lane.b32.xlu0 %v2183_v27, %s2066_s20 }
 0x466   :  { %830 = vrot.lane.b32.xlu1 %v2159_v11, %s2075_s28 }
 0x469   :  { %856 = vrot.lane.b32.xlu0 %v2172_v25, %s2066_s20 }
 0x46a   :  { %828 = vrot.lane.b32.xlu1 %v2154_v10, %s2075_s28 }
 0x46e   :  { %862 = vrot.lane.b32.xlu1 %v2154_v10, %s2076_s29 }
 0x4c2   :  { %v336_v5 = vpop.xlane.xlu1 %335 }
 0x4c3   :  { %2026 = vrcp.f32 %v336_v5 }
 0x4c4   :  { %v333_v6 = vpop.xlane.xlu0 %332 }
 0x4c5   :  { %2028 = vrcp.f32 %v333_v6 }
 0x4ca   :  { %v565_v7 = vpop.xlane.xlu1 %564 }
 0x4cb   :  { %2030 = vrcp.f32 %v565_v7 }
 0x4cc   :  { %v562_v8 = vpop.xlane.xlu0 %561 }
 0x4cd   :  { %2032 = vrcp.f32 %v562_v8 }
 0x4ce   :  { %v342_v9 = vpop.permute.xlu1 %341 }
 0x4d0   :  { %v344_v12 = vpop.permute.xlu0 %343  ;;  %v2027_v13 = vpop.eup %2026 }
 0x4d1   :  { %1894 = vmatprep.subr.mxu0 %v344_v12  ;;  %v340_v18 = vmul.f32 %v2027_v13, %v2019_v59 }
 0x4d2   :  { %v2029_v14 = vpop.eup %2028  ;;  %v817_v15 = vpop.permute.xlu1 %816  ;;  %1895 = vmatpush3.msra.mxu0 %v344_v12 }
 0x4d3   :  { %1896 = vmatprep.subr.mxu0 %v342_v9  ;;  %v339_v16 = vmul.f32 %v2029_v14, %v2021_v61 }
 0x4d4   :  { %1897 = vmatpush3.msra.mxu0 %v342_v9  ;;  %v823_v17 = vpop.permute.xlu0 %822 }
 0x4d5   :  { %v827_v19 = vsel %vm175_vm1, %v817_v15, %v823_v17  ;;  %1898 = vmatprep.mubr.msk.f32.mxu0 %vm318_vm9, %v339_v16  ;;  %1908 = vmatprep.subr.mxu0 %v344_v12 }
 0x4d6   :  { %v837_v20 = vmul.f32 %v827_v19, %v2205_v32  ;;  %v815_v21 = vpop.permute.xlu1 %814  ;;  %1899 = vmatmul.mubr.msk.f32.vlgmr.msra.gmra.mxu0 %vm318_vm9, %v340_v18 }
 0x4d7   :  { %1909 = vmatpush3.msra.mxu0 %v344_v12 }
 0x4d8   :  { %1910 = vmatprep.subr.mxu0 %v342_v9  ;;  %842 = vrot.lane.b32.xlu0 %v837_v20, %s2075_s28  ;;  %v821_v22 = vpop.permute.xlu0 %820  ;;  %v2031_v23 = vpop.eup %2030 }
 0x4d9   :  { %1911 = vmatpush3.msra.mxu0 %v342_v9  ;;  %v826_v24 = vsel %vm175_vm1, %v815_v21, %v821_v22  ;;  %v569_v38 = vmul.f32 %v2031_v23, %v2266_v63 }
 0x4da   :  { %v2033_v30 = vpop.eup %2032  ;;  %v836_v31 = vmul.f32 %v826_v24, %v2203_v29  ;;  %v849_v34 = vpop.permute.xlu1 %848  ;;  %1915 = vmatprep.subr.mxu0 %v651_v45 }
 0x4db   :  { %v568_v36 = vmul.f32 %v2033_v30, %v2025_v3 }
 0x4dc   :  { %840 = vrot.lane.b32.xlu0 %v836_v31, %s2075_s28  ;;  %v855_v37 = vpop.permute.xlu0 %854 }
 0x4dd   :  { %v860_v39 = vsel %vm175_vm1, %v849_v34, %v855_v37  ;;  %1912 = vmatprep.mubr.msk.f32.mxu0 %vm318_vm9, %v568_v36 }
 0x4de   :  { %v870_v40 = vmul.f32 %v860_v39, %v2203_v29  ;;  %1913 = vmatmul.mubr.msk.f32.vlgmr.msra.gmra.mxu0 %vm318_vm9, %v569_v38  ;;  %v851_v41 = vpop.permute.xlu1 %850 }
 0x4df   :  { %1916 = vmatpush3.msra.mxu0 %v651_v45 }
 0x4e0   :  { %864 = vrot.lane.b32.xlu0 %v2159_v11, %s2076_s29  ;;  %874 = vrot.lane.b32.xlu1 %v870_v40, %s2076_s29  ;;  %v857_v42 = vpop.permute.xlu0 %856 }
 0x4e1   :  { %v861_v43 = vsel %vm175_vm1, %v851_v41, %v857_v42  ;;  %1920 = vmatprep.subr.mxu0 %v428_v46 }
 0x4e2   :  { %v871_v44 = vmul.f32 %v861_v43, %v2205_v32  ;;  %v831_v47 = vpop.permute.xlu1 %830 }
 0x4e3   :  { %v835_v49 = vmul.f32 %v2172_v25, %v831_v47 }
 0x4e4   :  { %876 = vrot.lane.b32.xlu0 %v871_v44, %s2076_s29 }
 0x4e6   :  { %v829_v48 = vpop.permute.xlu1 %828 }
 0x4e7   :  { %v834_v52 = vmul.f32 %v829_v48, %v2183_v27 }
 0x4ea   :  { %v863_v53 = vpop.permute.xlu1 %862 }
 0x4eb   :  { %v868_v56 = vmul.f32 %v863_v53, %v2183_v27 }
 0x54a   :  { %v843_v50 = vpop.permute.xlu0 %842 }
 0x54b   :  { %v847_v51 = vadd.f32 %v843_v50, %v835_v49 }
 0x54d   :  { %892 = vrot.lane.b32.xlu1 %v847_v51, %s2077_s10 }
 0x54e   :  { %v841_v54 = vpop.permute.xlu0 %840 }
 0x54f   :  { %v846_v55 = vadd.f32 %v841_v54, %v834_v52 }
 0x551   :  { %890 = vrot.lane.b32.xlu0 %v846_v55, %s2077_s10 }
 0x552   :  { %v875_v57 = vpop.permute.xlu1 %874  ;;  %v865_v58 = vpop.permute.xlu0 %864 }
 0x553   :  { %v880_v59 = vadd.f32 %v875_v57, %v868_v56  ;;  %v869_v60 = vmul.f32 %v2172_v25, %v865_v58 }
 0x555   :  { %884 = vrot.lane.b32.xlu1 %v880_v59, %s2078_s11 }
 0x556   :  { %v877_v61 = vpop.permute.xlu0 %876 }
 0x557   :  { %v881_v62 = vadd.f32 %v877_v61, %v869_v60 }
 0x559   :  { %1170 = vrot.lane.b32.xlu1 %v2188_v28, %s2064_s18  ;;  %886 = vrot.lane.b32.xlu0 %v881_v62, %s2078_s11 }
 0x55d   :  { %1172 = vrot.lane.b32.xlu1 %v2179_v26, %s2064_s18  ;;  %1176 = vrot.lane.b32.xlu0 %v2183_v27, %s2074_s27 }
 0x561   :  { %1184 = vrot.lane.b32.xlu1 %v2154_v10, %s2079_s12  ;;  %1178 = vrot.lane.b32.xlu0 %v2172_v25, %s2074_s27 }
 0x565   :  { %1186 = vrot.lane.b32.xlu0 %v2159_v11, %s2079_s12 }
 0x596   :  { %v1900_v63 = vpop.f32.mrf.mxu0 }
 0x598   :  { %v419_v2 = vpop.f32.mrf.mxu0 }
 0x59e   :  { %v1914_v28 = vpop.f32.mrf.mxu0 }
 0x5a0   :  { %v642_v3 = vpop.f32.mrf.mxu0 }
 0x5a1   :  { %1917 = vmatprep.mubr.msk.f32.mxu0 %vm232_vm2, %v642_v3 }
 0x5a2   :  { %1918 = vmatmul.mubr.msk.f32.vlgmr.msra.gmra.mxu0 %vm232_vm2, %v1914_v28 }
 0x5a3   :  { %1922 = vmatprep.mubr.msk.f32.mxu0 %vm232_vm2, %v419_v2  ;;  %1921 = vmatpush3.msra.mxu0 %v428_v46 }
 0x5a6   :  { %1923 = vmatmul.mubr.msk.f32.vlgmr.msra.gmra.mxu0 %vm232_vm2, %v1900_v63 }
 0x5bf   :  { %v893_v10 = vpop.permute.xlu1 %892 }
 0x5c0   :  { %1925 = vmatprep.subr.msk.mxu0 %vm232_vm2, %v893_v10 }
 0x5c1   :  { %1926 = vmatpush3.xpose.msk.msra.mxu0 %vm232_vm2, %v893_v10 }
 0x5c3   :  { %v891_v26 = vpop.permute.xlu0 %890 }
 0x5c4   :  { %1927 = vmatprep.subr.msk.mxu0 %vm232_vm2, %v891_v26 }
 0x5c5   :  { %1928 = vmatpush3.xpose.msk.msra.mxu0 %vm232_vm2, %v891_v26 }
 0x5c6   :  { %1944 = vmatprep.subr.msk.mxu0 %vm232_vm2, %v893_v10 }
 0x5c7   :  { %v885_v11 = vpop.permute.xlu1 %884 }
 0x5c8   :  { %1929 = vmatprep.mubr.msk.f32.mxu0 %vm232_vm2, %v885_v11 }
 0x5cb   :  { %v887_v4 = vpop.permute.xlu0 %886  ;;  %v1171_v5 = vpop.permute.xlu1 %1170 }
 0x5cc   :  { %1930 = vmatmul.mubr.msk.f32.vlgmr.msra.gmra.mxu0 %vm232_vm2, %v887_v4 }
 0x5cd   :  { %1945 = vmatpush3.xpose.msk.msra.mxu0 %vm232_vm2, %v893_v10 }
 0x5ce   :  { %1946 = vmatprep.subr.msk.mxu0 %vm232_vm2, %v891_v26 }
 0x5cf   :  { %v1177_v6 = vpop.permute.xlu0 %1176  ;;  %v1173_v9 = vpop.permute.xlu1 %1172 }
 0x5d0   :  { %v1182_v7 = vsel %vm175_vm1, %v1171_v5, %v1177_v6 }
 0x5d1   :  { %v1192_v8 = vmul.f32 %v1182_v7, %v2203_v29  ;;  %1947 = vmatpush3.xpose.msk.msra.mxu0 %vm232_vm2, %v891_v26 }
 0x5d3   :  { %1196 = vrot.lane.b32.xlu1 %v1192_v8, %s2079_s12  ;;  %v1179_v12 = vpop.permute.xlu0 %1178  ;;  %v1185_v15 = vpop.permute.xlu1 %1184 }
 0x5d4   :  { %v1183_v13 = vsel %vm175_vm1, %v1173_v9, %v1179_v12  ;;  %v1190_v16 = vmul.f32 %v1185_v15, %v2183_v27 }
 0x5d5   :  { %v1193_v14 = vmul.f32 %v1183_v13, %v2205_v32 }
 0x5d7   :  { %1198 = vrot.lane.b32.xlu0 %v1193_v14, %s2079_s12  ;;  %v1187_v17 = vpop.permute.xlu0 %1186  ;;  %s2082_s12 = smov 64  }
 0x5d8   :  { %v1191_v29 = vmul.f32 %v2172_v25, %v1187_v17 }
 0x645   :  { %v1197_v18 = vpop.permute.xlu1 %1196 }
 0x646   :  { %v1202_v19 = vadd.f32 %v1197_v18, %v1190_v16  ;;  %v1392_v18 = vld [vmem:[%s2472_s3 + $0x18] sm:$0xff] }
 0x648   :  { %1206 = vrot.lane.b32.xlu1 %v1202_v19, %s2080_s13 }
 0x649   :  { %v1199_v20 = vpop.permute.xlu0 %1198 }
 0x64a   :  { %v1203_v21 = vadd.f32 %v1199_v20, %v1191_v29 }
 0x64c   :  { %1208 = vrot.lane.b32.xlu0 %v1203_v21, %s2080_s13 }
 0x662   :  { %v1919_v22 = vpop.f32.mrf.mxu0 }
 0x664   :  { %v724_v23 = vpop.f32.mrf.mxu0 }
 0x666   :  { %v1924_v24 = vpop.f32.mrf.mxu0 }
 0x667   :  { %v2356_v30 = vadd.f32 %v1924_v24, %v1919_v22 }
 0x668   :  { %v805_v32 = vpop.f32.mrf.mxu0 }
 0x669   :  { %v2358_v31 = vadd.f32 %v805_v32, %v724_v23 }
 0x68c   :  { %v1931_v34 = vpop.f32.mrf.mxu0 }
 0x68d   :  { %v974_v36 = vadd.f32 %v1931_v34, %v2252_v33 }
 0x68e   :  { %v968_v37 = vpop.f32.mrf.mxu0 }
 0x68f   :  { %v969_v38 = vadd.f32 %v968_v37, %v2254_v35  ;;  %v980_v39 = vsel %vm318_vm9, %v974_v36, -inf }
 0x690   :  { %981 = vmax.xlane.f32.xlu0 %v980_v39 }
 0x691   :  { %v977_v40 = vsel %vm318_vm9, %v969_v38, -inf }
 0x692   :  { %978 = vmax.xlane.f32.xlu1 %v977_v40 }
 0x6ba   :  { %v1207_v41 = vpop.permute.xlu1 %1206 }
 0x6bb   :  { %1948 = vmatprep.mubr.msk.f32.mxu0 %vm232_vm2, %v1207_v41  ;;  %v1501_v41 = vld [vmem:[%s2473_s4 + $0x8] sm:$0xff] }
 0x6be   :  { %v1209_v42 = vpop.permute.xlu0 %1208 }
 0x6bf   :  { %1949 = vmatmul.mubr.msk.f32.vlgmr.msra.gmra.mxu0 %vm232_vm2, %v1209_v42  ;;  %v1500_v42 = vld [vmem:[%s2473_s4] sm:$0xff] }
 0x719   :  { %v982_v43 = vpop.xlane.xlu0 %981 }
 0x71a   :  { %v984_v44 = vsub.f32 %v974_v36, %v982_v43 }
 0x71b   :  { %v979_v45 = vpop.xlane.xlu1 %978 }
 0x71c   :  { %v987_v46 = vmul.f32 1.442695, %v984_v44  ;;  %v983_v47 = vsub.f32 %v969_v38, %v979_v45 }
 0x71e   :  { %2034 = vpow2.f32 %v987_v46  ;;  %v985_v48 = vmul.f32 1.442695, %v983_v47 }
 0x720   :  { %2036 = vpow2.f32 %v985_v48 }
 0x72b   :  { %v2035_v49 = vpop.eup %2034 }
 0x72c   :  { %v992_v50 = vsel %vm318_vm9, %v2035_v49, 0.0 }
 0x72d   :  { %v2037_v51 = vpop.eup %2036  ;;  %993 = vadd.xlane.f32.xlu1 %v992_v50 }
 0x72e   :  { %v989_v52 = vsel %vm318_vm9, %v2037_v51, 0.0 }
 0x72f   :  { %990 = vadd.xlane.f32.xlu0 %v989_v52  ;;  %v1801_v52 = vld [vmem:[%s2471_s1 + $0x1] ss:$0 sm:$0xff] }
 0x73e   :  { %999 = vrot.lane.b32.xlu1 %v2183_v27, %s2081_s14 }
 0x745   :  { %1001 = vrot.lane.b32.xlu0 %v2172_v25, %s2081_s14  ;;  %v1086_v25 = vld [vmem:[%s2472_s3 + $0x10] sm:$0xff] }
 0x77f   :  { %v1950_v53 = vpop.f32.mrf.mxu0 }
 0x780   :  { %v1286_v54 = vadd.f32 %v1950_v53, %v2252_v33 }
 0x781   :  { %v1280_v55 = vpop.f32.mrf.mxu0 }
 0x782   :  { %v1281_v56 = vadd.f32 %v1280_v55, %v2254_v35  ;;  %v1292_v57 = vsel %vm318_vm9, %v1286_v54, -inf }
 0x783   :  { %1293 = vmax.xlane.f32.xlu0 %v1292_v57 }
 0x784   :  { %v1289_v58 = vsel %vm318_vm9, %v1281_v56, -inf }
 0x785   :  { %1290 = vmax.xlane.f32.xlu1 %v1289_v58 }
 0x7b6   :  { %v994_v59 = vpop.xlane.xlu1 %993 }
 0x7b7   :  { %2038 = vrcp.f32 %v994_v59 }
 0x7b8   :  { %v991_v60 = vpop.xlane.xlu0 %990 }
 0x7b9   :  { %2040 = vrcp.f32 %v991_v60 }
 0x7ba   :  { %v1000_v27 = vpop.permute.xlu1 %999 }
 0x7bc   :  { %v1002_v61 = vpop.permute.xlu0 %1001 }
 0x7bd   :  { %1932 = vmatprep.subr.mxu1 %v1002_v61 }
 0x7be   :  { %1933 = vmatpush3.msra.mxu1 %v1002_v61 }
 0x7bf   :  { %1934 = vmatprep.subr.mxu1 %v1000_v27 }
 0x7c0   :  { %1935 = vmatpush3.msra.mxu1 %v1000_v27 }
 0x7c1   :  { %1939 = vmatprep.subr.mxu1 %v1086_v25 }
 0x7c4   :  { %v2039_v33 = vpop.eup %2038 }
 0x7c5   :  { %v998_v63 = vmul.f32 %v2039_v33, %v2035_v49  ;;  %v1616_v33 = vld [vmem:[%s2474_s5 + $0x38] sm:$0xff] }
 0x7c6   :  { %v2041_v35 = vpop.eup %2040 }
 0x7c7   :  { %v997_v62 = vmul.f32 %v2041_v35, %v2037_v51  ;;  %v1615_v35 = vld [vmem:[%s2474_s5 + $0x30] sm:$0xff] }
 0x7c9   :  { %1936 = vmatprep.mubr.msk.f32.mxu1 %vm318_vm9, %v997_v62  ;;  %v1614_v62 = vld [vmem:[%s2474_s5 + $0x28] sm:$0xff] }
 0x7ca   :  { %1937 = vmatmul.mubr.msk.f32.vlgmr.msra.gmra.mxu1 %vm318_vm9, %v998_v63  ;;  %v1613_v63 = vld [vmem:[%s2474_s5 + $0x20] sm:$0xff] }
 0x7cb   :  { %1940 = vmatpush3.msra.mxu1 %v1086_v25 }
 0x7cc   :  { %1951 = vmatprep.subr.mxu1 %v1002_v61 }
 0x80c   :  { %v1294_v2 = vpop.xlane.xlu0 %1293 }
 0x80d   :  { %v1296_v28 = vsub.f32 %v1286_v54, %v1294_v2 }
 0x80e   :  { %v1291_v3 = vpop.xlane.xlu1 %1290 }
 0x80f   :  { %v1299_v10 = vmul.f32 1.442695, %v1296_v28  ;;  %v1295_v26 = vsub.f32 %v1281_v56, %v1291_v3  ;;  %v1612_v3 = vld [vmem:[%s2474_s5 + $0x18] sm:$0xff] }
 0x811   :  { %2042 = vpow2.f32 %v1299_v10  ;;  %v1297_v11 = vmul.f32 1.442695, %v1295_v26 }
 0x813   :  { %2044 = vpow2.f32 %v1297_v11  ;;  %v1611_v11 = vld [vmem:[%s2474_s5 + $0x10] sm:$0xff] }
 0x81e   :  { %v2043_v4 = vpop.eup %2042 }
 0x81f   :  { %v1304_v5 = vsel %vm318_vm9, %v2043_v4, 0.0 }
 0x820   :  { %v2045_v6 = vpop.eup %2044  ;;  %1305 = vadd.xlane.f32.xlu1 %v1304_v5  ;;  %v1609_v5 = vld [vmem:[%s2474_s5] sm:$0xff] }
 0x821   :  { %v1301_v7 = vsel %vm318_vm9, %v2045_v6, 0.0 }
 0x822   :  { %1302 = vadd.xlane.f32.xlu0 %v1301_v7 }
 0x88a   :  { %v1938_v8 = vpop.f32.mrf.mxu1 }
 0x88c   :  { %v1077_v9 = vpop.f32.mrf.mxu1 }
 0x88d   :  { %1941 = vmatprep.mubr.msk.f32.mxu1 %vm232_vm2, %v1077_v9 }
 0x88e   :  { %1942 = vmatmul.mubr.msk.f32.vlgmr.msra.gmra.mxu1 %vm232_vm2, %v1938_v8 }
 0x88f   :  { %1952 = vmatpush3.msra.mxu1 %v1002_v61 }
 0x890   :  { %1953 = vmatprep.subr.mxu1 %v1000_v27 }
 0x891   :  { %1954 = vmatpush3.msra.mxu1 %v1000_v27 }
 0x892   :  { %1958 = vmatprep.subr.mxu1 %v1392_v18 }
 0x8a9   :  { %v1306_v12 = vpop.xlane.xlu1 %1305 }
 0x8aa   :  { %2046 = vrcp.f32 %v1306_v12 }
 0x8ab   :  { %v1303_v13 = vpop.xlane.xlu0 %1302 }
 0x8ac   :  { %2048 = vrcp.f32 %v1303_v13 }
 0x8b7   :  { %v2047_v14 = vpop.eup %2046 }
 0x8b8   :  { %v1310_v17 = vmul.f32 %v2047_v14, %v2043_v4  ;;  %v1610_v4 = vld [vmem:[%s2474_s5 + $0x8] sm:$0xff] }
 0x8b9   :  { %v2049_v15 = vpop.eup %2048 }
 0x8ba   :  { %v1309_v16 = vmul.f32 %v2049_v15, %v2045_v6 }
 0x8bc   :  { %1955 = vmatprep.mubr.msk.f32.mxu1 %vm318_vm9, %v1309_v16 }
 0x8bd   :  { %1956 = vmatmul.mubr.msk.f32.vlgmr.msra.gmra.mxu1 %vm318_vm9, %v1310_v17 }
 0x8be   :  { %1959 = vmatpush3.msra.mxu1 %v1392_v18 }
 0x8bf   :  { %1974 = vmatprep.subr.mxu1 %v1616_v33 }
 0x94e   :  { %v1943_v19 = vpop.f32.mrf.mxu1 }
 0x94f   :  { %v1169_v29 = vadd.f32 %v1943_v19, %v2356_v30 }
 0x950   :  { %v1159_v20 = vpop.f32.mrf.mxu1 }
 0x951   :  { %v1168_v21 = vadd.f32 %v1159_v20, %v2358_v31 }
 0x97d   :  { %v1957_v22 = vpop.f32.mrf.mxu1 }
 0x97f   :  { %v1383_v23 = vpop.f32.mrf.mxu1 }
 0x980   :  { %1960 = vmatprep.mubr.msk.f32.mxu1 %vm232_vm2, %v1383_v23 }
 0x981   :  { %1961 = vmatmul.mubr.msk.f32.vlgmr.msra.gmra.mxu1 %vm232_vm2, %v1957_v22 }
 0x982   :  { %1975 = vmatpush3.msra.mxu1 %v1616_v33 }
 0x983   :  { %1976 = vmatprep.subr.mxu1 %v1615_v35 }
 0x984   :  { %1977 = vmatpush3.msra.mxu1 %v1615_v35 }
 0x985   :  { %1978 = vmatprep.subr.mxu1 %v1614_v62 }
 0x986   :  { %1979 = vmatpush3.msra.mxu1 %v1614_v62 }
 0x987   :  { %1980 = vmatprep.subr.mxu1 %v1613_v63 }
 0x988   :  { %1981 = vmatpush3.msra.mxu1 %v1613_v63 }
 0x989   :  { %1982 = vmatprep.subr.mxu1 %v1612_v3 }
 0x98a   :  { %1983 = vmatpush3.msra.mxu1 %v1612_v3 }
 0x98b   :  { %1984 = vmatprep.subr.mxu1 %v1611_v11 }
 0x98c   :  { %1985 = vmatpush3.msra.mxu1 %v1611_v11 }
 0x98d   :  { %1986 = vmatprep.subr.mxu1 %v1610_v4 }
 0x98e   :  { %1987 = vmatpush3.msra.mxu1 %v1610_v4 }
 0x98f   :  { %1988 = vmatprep.subr.mxu1 %v1609_v5 }
 0x990   :  { %1989 = vmatpush3.msra.mxu1 %v1609_v5 }
 0xa41   :  { %v1962_v24 = vpop.f32.mrf.mxu1 }
 0xa42   :  { %v1475_v32 = vadd.f32 %v1962_v24, %v1169_v29 }
 0xa43   :  { %v1465_v34 = vpop.f32.mrf.mxu1 }
 0xa44   :  { %v2393_v36 = vadd.f32 %v1475_v32, %v2131_v1  ;;  %v1474_v37 = vadd.f32 %v1465_v34, %v1168_v21  ;;  %v1503_v1 = vld [vmem:[%s2473_s4 + $0x18] sm:$0xff] }
 0xa45   :  { %1963 = vmatprep.subr.mxu0 %v1503_v1 }
 0xa46   :  { %v2396_v38 = vadd.f32 %v1474_v37, %v2126_v0  ;;  %v1479_v30 = vmul.f32 %v2393_v36, %v2393_v36  ;;  %v1502_v0 = vld [vmem:[%s2473_s4 + $0x10] sm:$0xff]  ;;  %1964 = vmatpush3.msra.mxu0 %v1503_v1 }
 0xa47   :  { %1965 = vmatprep.subr.mxu0 %v1502_v0 }
 0xa48   :  { %v1483_v31 = vsel %vm34_vm0, %v1479_v30, 0.0  ;;  %v1478_v39 = vmul.f32 %v2396_v38, %v2396_v38  ;;  %1966 = vmatpush3.msra.mxu0 %v1502_v0 }
 0xa49   :  { %1484 = vadd.xlane.f32.xlu1 %v1483_v31  ;;  %1967 = vmatprep.subr.mxu0 %v1501_v41 }
 0xa4a   :  { %v1480_v40 = vsel %vm34_vm0, %v1478_v39, 0.0  ;;  %1968 = vmatpush3.msra.mxu0 %v1501_v41 }
 0xa4b   :  { %1481 = vadd.xlane.f32.xlu0 %v1480_v40  ;;  %1969 = vmatprep.subr.mxu0 %v1500_v42 }
 0xa4c   :  { %1970 = vmatpush3.msra.mxu0 %v1500_v42 }
 0xad2   :  { %v1485_v43 = vpop.xlane.xlu1 %1484 }
 0xad3   :  { %v1487_v44 = vmul.f32 0.03125, %v1485_v43 }
 0xad4   :  { %v1482_v45 = vpop.xlane.xlu0 %1481 }
 0xad5   :  { %v1489_v46 = vadd.f32 1e-06, %v1487_v44  ;;  %v1486_v47 = vmul.f32 0.03125, %v1482_v45 }
 0xad7   :  { %2050 = vrsqrt.f32 %v1489_v46  ;;  %v1488_v48 = vadd.f32 1e-06, %v1486_v47 }
 0xad9   :  { %2052 = vrsqrt.f32 %v1488_v48 }
 0xae4   :  { %v2051_v49 = vpop.eup %2050 }
 0xae5   :  { %v1493_v51 = vmul.f32 %v2051_v49, %v2393_v36 }
 0xae6   :  { %v2053_v50 = vpop.eup %2052 }
 0xae7   :  { %v1492_v53 = vmul.f32 %v2053_v50, %v2396_v38  ;;  %v1499_v55 = vmul.f32 %v1801_v52, %v1493_v51 }
 0xae9   :  { %v1498_v54 = vmul.f32 %v1801_v52, %v1492_v53 }
 0xaeb   :  { %1971 = vmatprep.mubr.msk.f32.mxu0 %vm34_vm0, %v1498_v54 }
 0xaec   :  { %1972 = vmatmul.mubr.msk.f32.vlgmr.msra.gmra.mxu0 %vm34_vm0, %v1499_v55 }
 0xbac   :  { %v1973_v56 = vpop.f32.mrf.mxu0 }
 0xbad   :  { %v1805_v57 = vmul.f32 -1.442695, %v1973_v56 }
 0xbae   :  { %v1576_v58 = vpop.f32.mrf.mxu0 }
 0xbaf   :  { %2054 = vpow2.f32 %v1805_v57  ;;  %v1804_v59 = vmul.f32 -1.442695, %v1576_v58 }
 0xbb1   :  { %2056 = vpow2.f32 %v1804_v59 }
 0xbbc   :  { %v2055_v60 = vpop.eup %2054 }
 0xbbd   :  { %v1592_v61 = vadd.f32 1.0, %v2055_v60 }
 0xbbe   :  { %v2057_v27 = vpop.eup %2056 }
 0xbbf   :  { %2058 = vrcp.f32 %v1592_v61  ;;  %v1591_v25 = vadd.f32 1.0, %v2057_v27 }
 0xbc1   :  { %2060 = vrcp.f32 %v1591_v25 }
 0xbcc   :  { %v2059_v2 = vpop.eup %2058 }
 0xbcd   :  { %v1598_v28 = vmul.f32 %v2059_v2, %v1973_v56 }
 0xbce   :  { %v2061_v10 = vpop.eup %2060 }
 0xbcf   :  { %v1597_v26 = vmul.f32 %v2061_v10, %v1576_v58  ;;  %1603 = vrot.lane.b32.xlu1 %v1598_v28, %s2082_s12 }
 0xbd1   :  { %1601 = vrot.lane.b32.xlu0 %v1597_v26, %s2082_s12 }
 0xc41   :  { %v1604_v6 = vpop.permute.xlu1 %1603 }
 0xc42   :  { %v1608_v7 = vmul.f32 %v1973_v56, %v1604_v6 }
 0xc43   :  { %v1602_v8 = vpop.permute.xlu0 %1601 }
 0xc44   :  { %v1607_v9 = vmul.f32 %v1602_v8, %v1576_v58  ;;  %1621 = vrot.lane.b32.xlu0 %v1608_v7, %s2082_s12 }
 0xc46   :  { %1619 = vrot.lane.b32.xlu1 %v1607_v9, %s2082_s12 }
 0xcb6   :  { %v1622_v13 = vpop.permute.xlu0 %1621 }
 0xcb8   :  { %v1620_v12 = vpop.permute.xlu1 %1619 }
 0xcb9   :  { %1990 = vmatprep.mubr.msk.f32.mxu1 %vm1623_vm10, %v1620_v12 }
 0xcba   :  { %1991 = vmatmul.mubr.msk.f32.vlgmr.msra.gmra.mxu1 %vm1623_vm10, %v1622_v13 }
 0xd7a   :  { %v1992_v14 = vpop.f32.mrf.mxu1 }
 0xd7b   :  { %v1704_v15 = vadd.f32 %v1992_v14, %v2393_v36 }
 0xd7c   :  { %v1694_v16 = vpop.f32.mrf.mxu1 }
 0xd7d   :  { %v1703_v17 = vadd.f32 %v1694_v16, %v2396_v38  ;;  %v1726_v18 = vrot.slane %v1704_v15, 1  ;;  %v1730_v29 = vrot.slane %v1704_v15, 2  ;;  %v1734_v21 = vrot.slane %v1704_v15, 3 }
 0xd7f   :  { %1727 = vrot.lane.b32.xlu0 %v1726_v18, %s2067_s21  ;;  %v1706_v19 = vrot.slane %v1703_v17, 1  ;;  %v1710_v20 = vrot.slane %v1703_v17, 2  ;;  %v1714_v22 = vrot.slane %v1703_v17, 3 }
 0xd81   :  { %1707 = vrot.lane.b32.xlu1 %v1706_v19, %s2067_s21 }
 0xd83   :  { %1731 = vrot.lane.b32.xlu0 %v1730_v29, %s2082_s12 }
 0xd85   :  { %1711 = vrot.lane.b32.xlu1 %v1710_v20, %s2082_s12 }
 0xd87   :  { %1735 = vrot.lane.b32.xlu0 %v1734_v21, %s2070_s24 }
 0xd89   :  { %1715 = vrot.lane.b32.xlu1 %v1714_v22, %s2070_s24 }
 0xdf1   :  { %v1728_v23 = vpop.permute.xlu0 %1727 }
 0xdf2   :  { %v1738_v36 = vsel %vm34_vm0, %v1704_v15, %v1728_v23 }
 0xdf3   :  { %v1708_v24 = vpop.permute.xlu1 %1707 }
 0xdf4   :  { %v1718_v30 = vsel %vm34_vm0, %v1703_v17, %v1708_v24 }
 0xdf5   :  { %v1732_v32 = vpop.permute.xlu0 %1731 }
 0xdf6   :  { %v1739_v37 = vsel %vm1623_vm10, %v1738_v36, %v1732_v32 }
 0xdf7   :  { %v1712_v34 = vpop.permute.xlu1 %1711 }
 0xdf8   :  { %v1719_v39 = vsel %vm1623_vm10, %v1718_v30, %v1712_v34 }
 0xdf9   :  { %v1736_v38 = vpop.permute.xlu0 %1735 }
 0xdfa   :  { %v1740_v31 = vsel %vm1720_vm11, %v1739_v37, %v1736_v38 }
 0xdfb   :  { %v1743_v40 = vrot.slane %v1740_v31, 7  ;;  %v1716_v1 = vpop.permute.xlu1 %1715  ;;  %v1808_v41 = vrot.slane %v1740_v31, 11 }
 0xdfc   :  { %v1721_v0 = vsel %vm1720_vm11, %v1719_v39, %v1716_v1 }
 0xdfd   :  { %v1723_v42 = vrot.slane %v1721_v0, 4  ;;  %v1748_v43 = vsel %vm1747_vm12, %v1721_v0, %v1743_v40 }
 0xdff   :  { %v1749_v44 = vsel %vm1747_vm12, %v1723_v42, %v1808_v41 }
 0xe00   :  { %v1752_v45 = vcombine.low %v1748_v43, %v1749_v44 }
 0xe02   :  { %1809 = vst.sshfl [vmem:[%s2475_s7] sm:$0x33 pattern:$0x76325410] %v1752_v45 }

</bundles_post_ra>
